<compile_context>
chip_gen: v6e
topology: v6e:2x2x1
jax: 0.10.0
libtpu: 0.0.40
codegen_flags: <defaults>
</compile_context>

<pallas_src>
import jax
import jax.numpy as jnp
from jax.experimental import pallas as pl
from jax.experimental.pallas import tpu as pltpu

STATE_DIM = 4      # CartPole-v1 observation_space.shape[0]
ACTION_DIM = 2     # CartPole-v1 action_space.n
HIDDEN = 128
OUT_WIDTH = 8      # narrow padded output width (>= ACTION_DIM); 32 B/row f32


def _round_up(v, m):
    return ((v + m - 1) // m) * m


def dqn_kernel(x_ref, w1_ref, b1_ref, w2_ref, b2_ref, w3_ref, b3_ref, o_ref):
    x = x_ref[...]                     # (tm, STATE_DIM) f32
    w1 = w1_ref[...]                   # (STATE_DIM, HIDDEN) f32

    # --- Layer 1 (K = 4) on the VPU.  A full MXU contraction pass would be
    # wasted at K=4, so do 4 broadcast FMAs over the (tm, 128) tile, tree-
    # reduced to cut the serial add chain from 4 to 2 levels.
    terms = [x[:, k:k + 1] * w1[k:k + 1, :] for k in range(STATE_DIM)]
    while len(terms) > 1:
        nxt = [terms[i] + terms[i + 1] for i in range(0, len(terms) - 1, 2)]
        if len(terms) % 2:
            nxt.append(terms[-1])
        terms = nxt
    h1 = jnp.maximum(terms[0] + b1_ref[...], 0.0)          # (tm, HIDDEN) f32

    # --- Layer 2 on the MXU: bf16 operands, f32 accumulation; bias/ReLU in f32
    # (v5e VPU has no bf16).
    h2 = jnp.dot(h1.astype(jnp.bfloat16), w2_ref[...],
                 preferred_element_type=jnp.float32) + b2_ref[...]
    h2 = jnp.maximum(h2, 0.0)                               # (tm, HIDDEN) f32

    # --- Layer 3 (N = 2) in exact f32 on the VPU/XLU: one lane reduction per
    # action over h2, scattered into a narrow lane-tile.  This replaces the
    # previous 128-lane-padded MXU matmul and its 64 KB/tile f32 writeback.
    w3t = w3_ref[...]                  # (ACTION_DIM, HIDDEN) f32
    tm = h2.shape[0]
    lane = jax.lax.broadcasted_iota(jnp.int32, (tm, OUT_WIDTH), 1)
    out = jnp.zeros((tm, OUT_WIDTH), jnp.float32)
    for a in range(ACTION_DIM):
        q_a = jnp.sum(h2 * w3t[a:a + 1, :], axis=-1, keepdims=True)  # (tm, 1)
        out = jnp.where(lane == a, q_a, out)
    o_ref[...] = out + b3_ref[...]     # narrow (tm, OUT_WIDTH) f32 store


def dqn_forward(x, kernel_params, *, tm=1024):
    """x: (batch, STATE_DIM) f32. Returns (batch, ACTION_DIM) f32 Q-values."""
    w1, b1, w2, b2, w3t, b3p = kernel_params
    batch = x.shape[0]

    # Batch tiling: sublane-aligned (multiple of 8), as large as the padded
    # batch allows (grid-step overhead dominates small tiles), but with >= 2
    # grid steps whenever possible so the "parallel" batch axis feeds both
    # TensorCores on v7x.
    pad_b = _round_up(max(batch, 8), 8)
    tm = _round_up(max(8, min(tm, pad_b)), 8)
    if pad_b <= tm and pad_b > 8:
        tm = _round_up(pl.cdiv(pad_b, 2), 8)
    pad_b = _round_up(pad_b, tm)
    if pad_b != batch:
        x = jnp.pad(x, ((0, pad_b - batch), (0, 0)))

    def x_map(i):
        return (i, 0)

    def resident(shape):
        # Constant index_map -> block fetched once and kept VMEM-resident;
        # Buffered(1) drops the pointless second buffer for these weights.
        return pl.BlockSpec(shape, lambda i: (0, 0), pipeline_mode=pl.Buffered(1))

    out = pl.pallas_call(
        dqn_kernel,
        out_shape=jax.ShapeDtypeStruct((pad_b, OUT_WIDTH), jnp.float32),
        grid=(pad_b // tm,),
        in_specs=[
            pl.BlockSpec((tm, STATE_DIM), x_map),   # x tile (double-buffered)
            resident((STATE_DIM, HIDDEN)),          # w1 (f32)
            resident((1, HIDDEN)),                  # b1 (f32)
            resident((HIDDEN, HIDDEN)),             # w2 (bf16)
            resident((1, HIDDEN)),                  # b2 (f32)
            resident((ACTION_DIM, HIDDEN)),         # w3^T (f32)
            resident((1, OUT_WIDTH)),               # b3 padded (f32)
        ],
        out_specs=pl.BlockSpec((tm, OUT_WIDTH), x_map),
        compiler_params=pltpu.CompilerParams(
            dimension_semantics=("parallel",)),     # megacore on v7x
    )(x, w1, b1, w2, b2, w3t, b3p)
    return out[:batch, :ACTION_DIM]


def init_params(key):
    # PyTorch-style uniform init, stored as (in, out) weights + (1, out) biases.
    keys = jax.random.split(key, 6)

    def lin(kw, kb, fan_in, fan_out):
        bound = 1.0 / jnp.sqrt(fan_in)
        w = jax.random.uniform(kw, (fan_in, fan_out), jnp.float32, -bound, bound)
        b = jax.random.uniform(kb, (1, fan_out), jnp.float32, -bound, bound)
        return w, b

    w1, b1 = lin(keys[0], keys[1], STATE_DIM, HIDDEN)
    w2, b2 = lin(keys[2], keys[3], HIDDEN, HIDDEN)
    w3, b3 = lin(keys[4], keys[5], HIDDEN, ACTION_DIM)
    return (w1, b1, w2, b2, w3, b3)


def prepare_kernel_params(params):
    """Cast the MXU-side weight to bf16; transpose/pad the tiny output layer."""
    w1, b1, w2, b2, w3, b3 = params
    w2k = w2.astype(jnp.bfloat16)
    w3t = jnp.transpose(w3)                                   # (ACTION_DIM, HIDDEN) f32
    b3p = jnp.zeros((1, OUT_WIDTH), jnp.float32).at[:, :ACTION_DIM].set(b3)
    return (w1, b1, w2k, b2, w3t, b3p)


def dqn_reference_f32(x, params):
    # Original nn.Module semantics (all-f32).
    w1, b1, w2, b2, w3, b3 = params
    h1 = jnp.maximum(x @ w1 + b1, 0.0)
    h2 = jnp.maximum(h1 @ w2 + b2, 0.0)
    return h2 @ w3 + b3


def dqn_reference_kernel_math(x, params):
    # Mirrors the kernel: layer 2 with bf16 operands / f32 accumulation,
    # layers 1 and 3 in f32.
    w1, b1, w2, b2, w3, b3 = params
    h1 = jnp.maximum(x @ w1 + b1, 0.0)
    h2 = jnp.dot(h1.astype(jnp.bfloat16), w2.astype(jnp.bfloat16),
                 preferred_element_type=jnp.float32) + b2
    h2 = jnp.maximum(h2, 0.0)
    return h2 @ w3 + b3


# TODO(synk): fuse the target-network forward + Q[s, a] gather + TD-target math
# into this same pallas_call (shared x tile, both parameter sets VMEM-resident)
# to amortize dispatch overhead during training.

if __name__ == "__main__":
    key = jax.random.PRNGKey(0)
    k_x, k_p = jax.random.split(key)
    batch = 16
    x = jax.random.normal(k_x, (batch, STATE_DIM), jnp.float32)
    params = init_params(k_p)
    kparams = prepare_kernel_params(params)

    # batch=16 with default tm -> the auto-tiling picks tm=8 / 2 grid steps,
    # exercising pipelining, resident single-buffered weights, and the
    # parallel batch axis.  At replay/rollout batch sizes tm grows to 1024.
    out = dqn_forward(x, kparams)
    jax.block_until_ready(out)
    assert out.shape == (batch, ACTION_DIM)

    ref_k = dqn_reference_kernel_math(x, params)   # same math as the kernel
    ref_f = dqn_reference_f32(x, params)           # original module semantics
    assert jnp.allclose(out, ref_k, atol=1e-2, rtol=1e-2)
    assert jnp.allclose(out, ref_f, atol=5e-2, rtol=5e-2)
    print("KERNEL_OK")
</pallas_src>

<mosaic_0001>
module attributes {stable_mosaic.version = 11 : i64} {
  func.func @dqn_kernel(%arg0: i32, %arg1: memref<8x4xf32, #tpu.memory_space<vmem>>, %arg2: memref<4x128xf32, #tpu.memory_space<vmem>>, %arg3: memref<1x128xf32, #tpu.memory_space<vmem>>, %arg4: memref<128x128xbf16, #tpu.memory_space<vmem>>, %arg5: memref<1x128xf32, #tpu.memory_space<vmem>>, %arg6: memref<2x128xf32, #tpu.memory_space<vmem>>, %arg7: memref<1x8xf32, #tpu.memory_space<vmem>>, %arg8: memref<8x8xf32, #tpu.memory_space<vmem>>) attributes {dimension_semantics = [#tpu.dimension_semantics<parallel>], iteration_bounds = array<i64: 2>, scalar_prefetch = 0 : i64, scratch_operands = 0 : i64, tpu.core_type = #tpu.core_type<tc>, window_params = [{transform_indices = @transform_0, window_bounds = array<i64: 8, 4>}, {pipeline_mode = #tpu.pipeline_mode<synchronous>, transform_indices = @transform_1, window_bounds = array<i64: 4, 128>}, {pipeline_mode = #tpu.pipeline_mode<synchronous>, transform_indices = @transform_2, window_bounds = array<i64: 1, 128>}, {pipeline_mode = #tpu.pipeline_mode<synchronous>, transform_indices = @transform_3, window_bounds = array<i64: 128, 128>}, {pipeline_mode = #tpu.pipeline_mode<synchronous>, transform_indices = @transform_4, window_bounds = array<i64: 1, 128>}, {pipeline_mode = #tpu.pipeline_mode<synchronous>, transform_indices = @transform_5, window_bounds = array<i64: 2, 128>}, {pipeline_mode = #tpu.pipeline_mode<synchronous>, transform_indices = @transform_6, window_bounds = array<i64: 1, 8>}, {transform_indices = @transform_7, window_bounds = array<i64: 8, 8>}]} {
    %c0 = arith.constant 0 : index
    %c0_0 = arith.constant 0 : index
    %0 = vector.load %arg1[%c0, %c0_0] : memref<8x4xf32, #tpu.memory_space<vmem>>, vector<8x4xf32>
    %c0_1 = arith.constant 0 : index
    %c0_2 = arith.constant 0 : index
    %1 = vector.load %arg2[%c0_1, %c0_2] : memref<4x128xf32, #tpu.memory_space<vmem>>, vector<4x128xf32>
    %2 = vector.extract_strided_slice %0 {offsets = [0, 0], sizes = [8, 1], strides = [1, 1]} : vector<8x4xf32> to vector<8x1xf32>
    %3 = vector.extract_strided_slice %1 {offsets = [0, 0], sizes = [1, 128], strides = [1, 1]} : vector<4x128xf32> to vector<1x128xf32>
    %4 = vector.broadcast %2 : vector<8x1xf32> to vector<8x128xf32>
    %5 = vector.broadcast %3 : vector<1x128xf32> to vector<8x128xf32>
    %6 = arith.mulf %4, %5 : vector<8x128xf32>
    %7 = vector.extract_strided_slice %0 {offsets = [0, 1], sizes = [8, 1], strides = [1, 1]} : vector<8x4xf32> to vector<8x1xf32>
    %8 = vector.extract_strided_slice %1 {offsets = [1, 0], sizes = [1, 128], strides = [1, 1]} : vector<4x128xf32> to vector<1x128xf32>
    %9 = vector.broadcast %7 : vector<8x1xf32> to vector<8x128xf32>
    %10 = vector.broadcast %8 : vector<1x128xf32> to vector<8x128xf32>
    %11 = arith.mulf %9, %10 : vector<8x128xf32>
    %12 = vector.extract_strided_slice %0 {offsets = [0, 2], sizes = [8, 1], strides = [1, 1]} : vector<8x4xf32> to vector<8x1xf32>
    %13 = vector.extract_strided_slice %1 {offsets = [2, 0], sizes = [1, 128], strides = [1, 1]} : vector<4x128xf32> to vector<1x128xf32>
    %14 = vector.broadcast %12 : vector<8x1xf32> to vector<8x128xf32>
    %15 = vector.broadcast %13 : vector<1x128xf32> to vector<8x128xf32>
    %16 = arith.mulf %14, %15 : vector<8x128xf32>
    %17 = vector.extract_strided_slice %0 {offsets = [0, 3], sizes = [8, 1], strides = [1, 1]} : vector<8x4xf32> to vector<8x1xf32>
    %18 = vector.extract_strided_slice %1 {offsets = [3, 0], sizes = [1, 128], strides = [1, 1]} : vector<4x128xf32> to vector<1x128xf32>
    %19 = vector.broadcast %17 : vector<8x1xf32> to vector<8x128xf32>
    %20 = vector.broadcast %18 : vector<1x128xf32> to vector<8x128xf32>
    %21 = arith.mulf %19, %20 : vector<8x128xf32>
    %22 = arith.addf %6, %11 : vector<8x128xf32>
    %23 = arith.addf %16, %21 : vector<8x128xf32>
    %24 = arith.addf %22, %23 : vector<8x128xf32>
    %c0_3 = arith.constant 0 : index
    %c0_4 = arith.constant 0 : index
    %25 = vector.load %arg3[%c0_3, %c0_4] : memref<1x128xf32, #tpu.memory_space<vmem>>, vector<1x128xf32>
    %26 = vector.broadcast %25 : vector<1x128xf32> to vector<8x128xf32>
    %27 = arith.addf %24, %26 : vector<8x128xf32>
    %cst = arith.constant 0.000000e+00 : f32
    %28 = vector.broadcast %cst : f32 to vector<8x128xf32>
    %29 = arith.maximumf %27, %28 : vector<8x128xf32>
    %30 = arith.truncf %29 : vector<8x128xf32> to vector<8x128xbf16>
    %c0_5 = arith.constant 0 : index
    %c0_6 = arith.constant 0 : index
    %31 = vector.load %arg4[%c0_5, %c0_6] : memref<128x128xbf16, #tpu.memory_space<vmem>>, vector<128x128xbf16>
    %cst_7 = arith.constant dense<0.000000e+00> : vector<8x128xf32>
    %32 = tpu.matmul %30, %31, %cst_7 {dimension_numbers = #tpu.dot_dimension_numbers<[1], [0], [0], [1], [0, 0, 1, 1], [], []>} : vector<8x128xbf16>, vector<128x128xbf16>, vector<8x128xf32> -> vector<8x128xf32>
    %c0_8 = arith.constant 0 : index
    %c0_9 = arith.constant 0 : index
    %33 = vector.load %arg5[%c0_8, %c0_9] : memref<1x128xf32, #tpu.memory_space<vmem>>, vector<1x128xf32>
    %34 = vector.broadcast %33 : vector<1x128xf32> to vector<8x128xf32>
    %35 = arith.addf %32, %34 : vector<8x128xf32>
    %cst_10 = arith.constant 0.000000e+00 : f32
    %36 = vector.broadcast %cst_10 : f32 to vector<8x128xf32>
    %37 = arith.maximumf %35, %36 : vector<8x128xf32>
    %c0_11 = arith.constant 0 : index
    %c0_12 = arith.constant 0 : index
    %38 = vector.load %arg6[%c0_11, %c0_12] : memref<2x128xf32, #tpu.memory_space<vmem>>, vector<2x128xf32>
    %39 = tpu.iota {dimensions = array<i32: 1>} : vector<8x8xi32>
    %cst_13 = arith.constant 0.000000e+00 : f32
    %40 = vector.broadcast %cst_13 : f32 to vector<8x8xf32>
    %41 = vector.extract_strided_slice %38 {offsets = [0, 0], sizes = [1, 128], strides = [1, 1]} : vector<2x128xf32> to vector<1x128xf32>
    %42 = vector.broadcast %41 : vector<1x128xf32> to vector<8x128xf32>
    %43 = arith.mulf %37, %42 : vector<8x128xf32>
    %cst_14 = arith.constant dense<0.000000e+00> : vector<8xf32>
    %44 = vector.multi_reduction <add>, %43, %cst_14 [1] : vector<8x128xf32> to vector<8xf32>
    %45 = vector.shape_cast %44 : vector<8xf32> to vector<8x1xf32>
    %c0_i32 = arith.constant 0 : i32
    %46 = vector.broadcast %c0_i32 : i32 to vector<8x8xi32>
    %47 = arith.cmpi eq, %39, %46 : vector<8x8xi32>
    %48 = vector.shape_cast %45 : vector<8x1xf32> to vector<8x1xf32>
    %49 = vector.broadcast %48 : vector<8x1xf32> to vector<8x8xf32>
    %50 = arith.select %47, %49, %40 : vector<8x8xi1>, vector<8x8xf32>
    %51 = vector.extract_strided_slice %38 {offsets = [1, 0], sizes = [1, 128], strides = [1, 1]} : vector<2x128xf32> to vector<1x128xf32>
    %52 = vector.broadcast %51 : vector<1x128xf32> to vector<8x128xf32>
    %53 = arith.mulf %37, %52 : vector<8x128xf32>
    %cst_15 = arith.constant dense<0.000000e+00> : vector<8xf32>
    %54 = vector.multi_reduction <add>, %53, %cst_15 [1] : vector<8x128xf32> to vector<8xf32>
    %55 = vector.shape_cast %54 : vector<8xf32> to vector<8x1xf32>
    %c1_i32 = arith.constant 1 : i32
    %56 = vector.broadcast %c1_i32 : i32 to vector<8x8xi32>
    %57 = arith.cmpi eq, %39, %56 : vector<8x8xi32>
    %58 = vector.shape_cast %55 : vector<8x1xf32> to vector<8x1xf32>
    %59 = vector.broadcast %58 : vector<8x1xf32> to vector<8x8xf32>
    %60 = arith.select %57, %59, %50 : vector<8x8xi1>, vector<8x8xf32>
    %c0_16 = arith.constant 0 : index
    %c0_17 = arith.constant 0 : index
    %61 = vector.load %arg7[%c0_16, %c0_17] : memref<1x8xf32, #tpu.memory_space<vmem>>, vector<1x8xf32>
    %62 = vector.broadcast %61 : vector<1x8xf32> to vector<8x8xf32>
    %63 = arith.addf %60, %62 : vector<8x8xf32>
    %c0_18 = arith.constant 0 : index
    %c0_19 = arith.constant 0 : index
    %64 = vector.load %arg8[%c0_18, %c0_19] : memref<8x8xf32, #tpu.memory_space<vmem>>, vector<8x8xf32>
    tpu.vector_store %arg8[%c0_18, %c0_19], %63 {strides = array<i32>} : memref<8x8xf32, #tpu.memory_space<vmem>>, vector<8x8xf32>,
    return
  }
  func.func @transform_0(%arg0: i32) -> (i32, i32) {
    %c0_i32 = arith.constant 0 : i32
    %c0_i32_0 = arith.constant 0 : i32
    return %arg0, %c0_i32 : i32, i32
  }
  func.func @transform_1(%arg0: i32) -> (i32, i32) {
    %c0_i32 = arith.constant 0 : i32
    %c0_i32_0 = arith.constant 0 : i32
    %c0_i32_1 = arith.constant 0 : i32
    return %c0_i32, %c0_i32_0 : i32, i32
  }
  func.func @transform_2(%arg0: i32) -> (i32, i32) {
    %c0_i32 = arith.constant 0 : i32
    %c0_i32_0 = arith.constant 0 : i32
    %c0_i32_1 = arith.constant 0 : i32
    return %c0_i32, %c0_i32_0 : i32, i32
  }
  func.func @transform_3(%arg0: i32) -> (i32, i32) {
    %c0_i32 = arith.constant 0 : i32
    %c0_i32_0 = arith.constant 0 : i32
    %c0_i32_1 = arith.constant 0 : i32
    return %c0_i32, %c0_i32_0 : i32, i32
  }
  func.func @transform_4(%arg0: i32) -> (i32, i32) {
    %c0_i32 = arith.constant 0 : i32
    %c0_i32_0 = arith.constant 0 : i32
    %c0_i32_1 = arith.constant 0 : i32
    return %c0_i32, %c0_i32_0 : i32, i32
  }
  func.func @transform_5(%arg0: i32) -> (i32, i32) {
    %c0_i32 = arith.constant 0 : i32
    %c0_i32_0 = arith.constant 0 : i32
    %c0_i32_1 = arith.constant 0 : i32
    return %c0_i32, %c0_i32_0 : i32, i32
  }
  func.func @transform_6(%arg0: i32) -> (i32, i32) {
    %c0_i32 = arith.constant 0 : i32
    %c0_i32_0 = arith.constant 0 : i32
    %c0_i32_1 = arith.constant 0 : i32
    return %c0_i32, %c0_i32_0 : i32, i32
  }
  func.func @transform_7(%arg0: i32) -> (i32, i32) {
    %c0_i32 = arith.constant 0 : i32
    %c0_i32_0 = arith.constant 0 : i32
    return %arg0, %c0_i32 : i32, i32
  }
}

</mosaic_0001>

<bundles_post_ra>
// kernel: tpu_custom_call.1
= control target key start
LH: loop header
LB: loop body
LE: loop exit
PB: predicated region body
PF: predicated region fallthrough
CT: control target
= control target key end

     0   :  { %12 = vsyncpa [#allocation3], 0  ;;  %s728_s24 = smov 0   ;;  %s789_s0 = inlined_call_operand.vmem [shape: f32[16,4], index: 0, kind: input, shape index: {}]   ;;  %s790_s1 = inlined_call_operand.vmem [shape: f32[4,128], index: 1, kind: input, shape index: {}]   ;;  %s791_s2 = inlined_call_operand.vmem [shape: f32[1,128], index: 2, kind: input, shape index: {}]   ;;  %s792_s3 = inlined_call_operand.hbm [shape: bf16[128,128], index: 3, kind: input, shape index: {}]   ;;  %s793_s4 = inlined_call_operand.vmem [shape: f32[1,128], index: 4, kind: input, shape index: {}]   ;;  %s794_s5 = inlined_call_operand.vmem [shape: f32[2,128], index: 5, kind: input, shape index: {}]   ;;  %s795_s6 = inlined_call_operand.vmem [shape: f32[1,8], index: 6, kind: input, shape index: {}]   ;;  %s796_s7 = inlined_call_operand.vmem [shape: f32[16,8], index: 7, kind: output, shape index: {}]  }
   0x1 LB: > { %s734_s25 = sadd.s32 4294967295, %s677_s24   ;;  %p552_p0 = scmp.ge.s32.totalorder %s677_s24, 1  ;;  %s677_s24 = sphi %s728_s24, %s18_s24  }
   0x2   : > { %p201_p1 = scmp.lt.s32.totalorder %s677_s24, 3  ;;  %s679_s26 = smov [#allocation2]  }
   0x3   : > { %s219_s27 = sshll.u32 %s679_s26, 4  ;;  %p609_p3 = scmp.eq.s32.totalorder %s734_s25, 0  ;;  %s220_s27 = int_to_ptr.vmem [resolvable:$true] %s219_s27 }
   0x4   : > { %p738_p2 = pnand %p552_p0, %p201_p1  ;;  %s652_s29 = scalar_lea.vmem %s220_s27, 1024 }
   0x5   : > { %p653_p7 = scmp.ne.s32.totalorder %s220_s27, %s652_s29  ;;  %p660_p10 = scmp.lt.s32.totalorder %s220_s27, %s220_s27 }
   0x6   : > { %p605_p4 = pneg %p738_p2  ;;  %p661_p11 = scmp.lt.s32.totalorder %s652_s29, %s652_s29 }
   0x8   : > { %p606_p5 = pnand %p609_p3, %p605_p4  ;;  %p662_p12 = por %p661_p11, %p660_p10 }
   0xa   : > { %p643_p6 = pneg %p606_p5 }
   0xc   : > { %p655_p8 = pnand %p653_p7, %p643_p6 }
   0xe   : > { %p656_p9 = pneg %p655_p8 }
  0x10   : > { %p663_p13 = pnand %p662_p12, %p656_p9 }
  0x12   : > { %666 = shalt.err (!%p663_p13)
}
  0x13   : > { %s680_s30 = smov 64   ;;  %s681_s8 = smov 4  }
  0x14   : > { %608 = dma.hbm_to_vmem [thread:$0]  (!%p606_p5), %s792_s3, 1024, %s220_s27, [#allocation3], %s680_s30, %s680_s30, %s681_s8  }
  0x15   : > { %251 = sbr.rel (%p738_p2) target bundleno = 516 (0x204), region = 48 }
  0x1a   : > { %672 = dma.done.wait (%p609_p3), [#allocation3], 1024  }
  0x1b   : > { %674 = vsyncadd (%p609_p3), [#allocation3], 4294966272  ;;  %p281_p0 = scmp.lt.s32.totalorder %s734_s25, 1  ;;  %v682_v0 = vmov 2   ;;  %v683_v1 = vmov 0   ;;  %v684_v2 = vmov 0.0   ;;  %v297_v14 = vlaneseq }
  0x1c   : > { %630 = vset.pattern.permute.xlu1 %v682_v0  ;;  %628 = vset.pattern.permute.xlu0 %v683_v1  ;;  %v633_v4 = vld [vmem:[#allocation2 + $0x38] sm:$0xff]   ;;  %v634_v5 = vld [vmem:[#allocation2 + $0x30] sm:$0xff]   ;;  %v685_v6 = vmov 3   ;;  %v686_v7 = vmov 1   ;;  %v635_v8 = vld [vmem:[#allocation2 + $0x28] sm:$0xff]   ;;  %vm687_vm0 = vmmov 0  }
  0x1d   : > { %s799_s25 = smov (!%p281_p0, %s734_s25), 1  ;;  %581 = vmatprep.subr.bf16.mxu0 %v684_v2  ;;  %597 = vmatprep.mubr.msk.bf16.mxu0 %vm687_vm0, %v684_v2  ;;  %v636_v9 = vld [vmem:[#allocation2 + $0x20] sm:$0xff]   ;;  %v637_v10 = vld [vmem:[#allocation2 + $0x18] sm:$0xff]   ;;  %v638_v11 = vld [vmem:[#allocation2 + $0x10] sm:$0xff]   ;;  %v298_v15 = vshrl.u32 %v297_v14, 7  ;;  %v456_v52 = vand.u32 127, %v297_v14 }
  0x1e   : > { %s557_s11 = sshll.u32 %s799_s25, 3  ;;  %582 = vmatpush3.bf16.msra.mxu0 %v633_v4  ;;  %v639_v12 = vld [vmem:[#allocation2 + $0x8] sm:$0xff]   ;;  %v640_v13 = vld [vmem:[#allocation2] sm:$0xff]   ;;  %vm483_vm3 = vcmask 64512  }
  0x1f   : > { %s284_s14 = scalar_lea.vmem %s789_s0, %s557_s11  ;;  %583 = vmatprep.subr.bf16.mxu0 %v684_v2  ;;  %v317_v16 = vsub.s32 2, %v298_v15  ;;  %v299_v17 = vsub.s32 0, %v298_v15  ;;  %v326_v18 = vsub.s32 3, %v298_v15  ;;  %v308_v19 = vsub.s32 1, %v298_v15  ;;  %v291_v20 = vld [vmem:[%s790_s1] sm:$0xf]  ;;  %s288_s29 = scalar_lea.vmem %s796_s7, %s557_s11 }
  0x20   : > { %v290_v3 = vld [vmem:[%s284_s14] sm:$0xff]  ;;  %vm464_vm1 = vcmp.eq.s32.totalorder %v456_v52, 0  ;;  %vm473_vm2 = vcmp.eq.s32.totalorder %v456_v52, 1 }
  0x21   : > { %312 = vperm.xlu1 %630, %v290_v3   ;;  %294 = vperm.xlu0 %628, %v290_v3   ;;  %v318_v23 = vrot.slane %v291_v20, %v317_v16  ;;  %v300_v24 = vrot.slane %v291_v20, %v299_v17  ;;  %v327_v25 = vrot.slane %v291_v20, %v326_v18  ;;  %v559_v35 = vld [vmem:[%s791_s2] ss:$0 sm:$0xff] }
  0x22   : > { %584 = vmatpush3.bf16.msra.mxu0 %v634_v5  ;;  %v309_v26 = vrot.slane %v291_v20, %v308_v19  ;;  %v560_v40 = vld [vmem:[%s793_s4] ss:$0 sm:$0xff] }
  0x23   : > { %585 = vmatprep.subr.bf16.mxu0 %v684_v2  ;;  %v454_v41 = vld [vmem:[%s794_s5] sm:$0x3] }
  0x24   : > { %v469_v44 = vrot.slane %v454_v41, %v308_v19  ;;  %v460_v45 = vrot.slane %v454_v41, %v299_v17  ;;  %v569_v54 = vld [vmem:[%s795_s6] ss:$0 sm:$0xff] }
  0x25   : > { %631 = vset.pattern.permute.xlu1 %v685_v6  ;;  %629 = vset.pattern.permute.xlu0 %v686_v7 }
  0x26   : > { %321 = vperm.xlu1 %631, %v290_v3   ;;  %303 = vperm.xlu0 %629, %v290_v3  }
  0x27   : > { %586 = vmatpush3.bf16.msra.mxu0 %v635_v8 }
  0x28   : > { %587 = vmatprep.subr.bf16.mxu0 %v684_v2 }
  0x2a   : > { %632 = vset.pattern.permute.xlu0 %v685_v6 }
  0x2b   : > { %588 = vmatpush3.bf16.msra.mxu0 %v636_v9 }
  0x2c   : > { %589 = vmatprep.subr.bf16.mxu0 %v684_v2 }
  0x2f   : > { %590 = vmatpush3.bf16.msra.mxu0 %v637_v10 }
  0x30   : > { %591 = vmatprep.subr.bf16.mxu0 %v684_v2 }
  0x33   : > { %592 = vmatpush3.bf16.msra.mxu0 %v638_v11 }
  0x34   : > { %593 = vmatprep.subr.bf16.mxu0 %v684_v2 }
  0x37   : > { %594 = vmatpush3.bf16.msra.mxu0 %v639_v12 }
  0x38   : > { %595 = vmatprep.subr.bf16.mxu0 %v684_v2 }
  0x3b   : > { %596 = vmatpush3.bf16.msra.mxu0 %v640_v13 }
  0x9c   : > { %v313_v21 = vpop.permute.xlu1 %312  ;;  %v295_v22 = vpop.permute.xlu0 %294 }
  0x9d   : > { %v319_v29 = vmul.f32 %v318_v23, %v313_v21  ;;  %v301_v30 = vmul.f32 %v300_v24, %v295_v22 }
  0xa1   : > { %v322_v27 = vpop.permute.xlu1 %321  ;;  %v304_v28 = vpop.permute.xlu0 %303 }
  0xa2   : > { %v328_v31 = vmul.f32 %v327_v25, %v322_v27  ;;  %v310_v32 = vmul.f32 %v309_v26, %v304_v28 }
  0xa4   : > { %v330_v33 = vadd.f32 %v328_v31, %v319_v29  ;;  %v329_v34 = vadd.f32 %v310_v32, %v301_v30 }
  0xa6   : > { %v331_v36 = vadd.f32 %v330_v33, %v329_v34 }
  0xa8   : > { %v339_v37 = vadd.f32 %v559_v35, %v331_v36 }
  0xaa   : > { %v340_v38 = vmax.f32 %v339_v37, 0.0 }
  0xac   : > { %v341_v39 = vpack.c.bf16 %v340_v38, %v340_v38 }
  0xae   : > { %598 = vmatmul.mubr.bf16.vlgmr.msra.gmra.mxu0 %v341_v39 }
 0x16e   : > { %v447_v42 = vpop.f32.mrf.mxu0 }
 0x16f   : > { %v448_v43 = vadd.f32 %v560_v40, %v447_v42 }
 0x170   : > { %v599_v46 = vpop.f32.mrf.mxu0 }
 0x171   : > { %v453_v47 = vmax.f32 %v448_v43, 0.0 }
 0x172   : > { %v450_v48 = vpop.f32.mrf.mxu0 }
 0x173   : > { %v470_v49 = vmul.f32 %v469_v44, %v453_v47  ;;  %v461_v50 = vmul.f32 %v460_v45, %v453_v47 }
 0x174   : > { %v600_v51 = vpop.f32.mrf.mxu0 }
 0x175   : > { %471 = vadd.xlane.f32.xlu0 %v470_v49  ;;  %462 = vadd.xlane.f32.xlu1 %v461_v50 }
 0x1fe   : > { %v472_v53 = vpop.xlane.xlu0 %471  ;;  %v463_v55 = vpop.xlane.xlu1 %462 }
 0x1ff   : > { %v465_v56 = vsel %vm464_vm1, %v463_v55, 0.0 }
 0x200   : > { %v474_v57 = vsel %vm473_vm2, %v472_v53, %v465_v56 }
 0x201   : > { %v482_v58 = vadd.f32 %v569_v54, %v474_v57 }
 0x203   : > { %484 = vst.msk [vmem:[%s288_s29] sm:$0xff] %vm483_vm3, %v482_v58 }
 0x204 PF: > { %s18_s24 = sadd.s32 1, %s677_s24  }
 0x205   : > { %p15_p1 = scmp.ge.s32.totalorder %s18_s24, 4  }
 0x207   :  { %17 = sbr.rel (!%p15_p1) target bundleno = 1 (0x1), region = 83 }
 0x20c   :  { %504 = vsyncpa [#allocation3], 1 }
 0x20d   :  { %506 = vsyncpa [#allocation3 + $0x1], 1 }

</bundles_post_ra>
